<compile_context>
chip_gen: v7x
topology: tpu7x:2x2x1
jax: 0.10.0
libtpu: 0.0.40
codegen_flags: <defaults>
</compile_context>

<pallas_src>
import functools
import math

import jax
import jax.numpy as jnp
import numpy as np
from jax import lax
from jax.experimental import pallas as pl
from jax.experimental.pallas import tpu as pltpu

_LANE = 128


def _round_up(x: int, m: int) -> int:
    return (x + m - 1) // m * m


def _sublane(dtype) -> int:
    # f32 tiles (8,128); bf16 (16,128); int8/fp8 (32,128).
    return 8 * (4 // max(1, jnp.dtype(dtype).itemsize))


def _padded_vmem_bytes(shape, dtype) -> int:
    """VMEM footprint with lane/sublane padding of the trailing two dims."""
    d = jnp.dtype(dtype)
    dims = list(shape)
    if not dims:
        return d.itemsize
    dims[-1] = _round_up(dims[-1], _LANE)
    if len(dims) >= 2:
        dims[-2] = _round_up(dims[-2], _sublane(d))
    n = 1
    for s in dims:
        n *= s
    return n * d.itemsize


def _vsgc_kernel(ahat_hbm, x_ref, w_ref, b_ref, out_ref, ahat_vmem, dma_sem,
                 *, num_layers: int, c1: float, c2: float, c3: float):
    # Kick off the (dominant) A_hat HBM->VMEM DMA, then hide it behind the
    # X @ W pre-transform (independent ops -> Mosaic overlaps them).
    if num_layers > 0:
        cp = pltpu.make_async_copy(ahat_hbm, ahat_vmem, dma_sem)
        cp.start()

    h0 = (jnp.dot(x_ref[...], w_ref[...], preferred_element_type=jnp.float32)
          + b_ref[...])
    h0_scaled = c2 * h0            # residual pre-scaled by alpha / (1 + lambd)

    if num_layers > 0:
        cp.wait()

    mx_dtype = ahat_vmem.dtype

    def body(_, h):
        # Cast the state to the adjacency dtype so a bf16 A_hat keeps the MXU
        # at bf16 x bf16 (no-op when f32); accumulation stays f32.
        s = jnp.dot(ahat_vmem[...], h.astype(mx_dtype),
                    preferred_element_type=jnp.float32)
        h_new = c1 * s + h0_scaled
        if c3 != 0.0:              # vanishes at trace time when alpha == 1
            h_new = h_new + c3 * h
        return h_new

    h = lax.fori_loop(0, num_layers, body, h0, unroll=(num_layers <= 8))
    out_ref[...] = h


def vsgc_net_pre(a_hat, x, w, b, *, num_layers: int, alpha: float = 1.0,
                 lambd: float = 1.0):
    """Forward of VSGCNetPre.

    a_hat: (N, N) sym-normalized adjacency (no self-loops).  It is used in the
           dtype it is given (cast it ONCE outside to bf16 for the fast path —
           this wrapper never re-casts the N^2 array).
    x: (N, F) features, w: (F, C) weight, b: (C,) bias.  Returns (N, C) f32.
    """
    N, F = x.shape
    C = w.shape[1]
    Cp = _round_up(max(C, _LANE), _LANE)     # lane-dense class dimension

    alpha = float(alpha)
    lambd = float(lambd)
    c1 = alpha * lambd / (1.0 + lambd)       # scales A_hat @ H
    c2 = alpha / (1.0 + lambd)               # scales the H0 residual
    c3 = 1.0 - alpha                         # scales the previous H

    # Zero-pad W / b to the lane-dense class dim (padded output columns remain
    # exactly 0 through every layer; sliced off below).  Tiny vs the N^2 term.
    w_p = jnp.zeros((F, Cp), dtype=w.dtype).at[:, :C].set(w)
    b_p = jnp.zeros((1, Cp), dtype=jnp.float32).at[0, :C].set(
        b.astype(jnp.float32))

    kernel = functools.partial(_vsgc_kernel, num_layers=int(num_layers),
                               c1=c1, c2=c2, c3=c3)

    vmem_spec = pl.BlockSpec(memory_space=pltpu.MemorySpace.VMEM)
    hbm_spec = pl.BlockSpec(memory_space=pl.ANY)   # A_hat: manual DMA

    # Padded-shape VMEM residency: A_hat scratch + X + W + b + out, plus slack
    # for the live H / H0 values (may spill to VMEM at larger N*Cp).
    resident = (_padded_vmem_bytes((N, N), a_hat.dtype)
                + _padded_vmem_bytes(x.shape, x.dtype)
                + _padded_vmem_bytes((F, Cp), w_p.dtype)
                + _padded_vmem_bytes((1, Cp), jnp.float32)
                + 3 * _padded_vmem_bytes((N, Cp), jnp.float32))
    try:
        phys_vmem = int(pltpu.get_tpu_info().vmem_capacity_bytes)
    except Exception:                 # conservative fallback = v7x floor
        phys_vmem = 64 << 20
    cap = int(phys_vmem * 0.85)
    if resident > cap:
        # TODO(synk): switch to the row-tiled streaming path described above.
        raise ValueError(
            f"resident VMEM {resident / 2**20:.1f} MiB exceeds chip cap "
            f"{cap / 2**20:.0f} MiB; row-tiled fallback not implemented.")
    vmem_limit = int(min(max(2 * resident, 16 << 20), cap))

    flops = 2 * N * F * Cp + 2 * int(num_layers) * N * N * Cp
    bytes_accessed = int(a_hat.size * jnp.dtype(a_hat.dtype).itemsize
                         + x.size * jnp.dtype(x.dtype).itemsize
                         + w_p.size * jnp.dtype(w_p.dtype).itemsize
                         + b_p.size * 4 + N * Cp * 4)

    out_p = pl.pallas_call(
        kernel,
        out_shape=jax.ShapeDtypeStruct((N, Cp), jnp.float32),
        in_specs=[hbm_spec, vmem_spec, vmem_spec, vmem_spec],
        out_specs=vmem_spec,
        scratch_shapes=[pltpu.VMEM((N, N), a_hat.dtype),
                        pltpu.SemaphoreType.DMA(())],
        compiler_params=pltpu.CompilerParams(vmem_limit_bytes=vmem_limit),
        cost_estimate=pl.CostEstimate(flops=flops, transcendentals=0,
                                      bytes_accessed=bytes_accessed),
    )(a_hat, x, w_p, b_p)
    return out_p[:, :C]


def _reference(a_hat, x, w, b, *, num_layers, alpha=1.0, lambd=1.0):
    h0 = x @ w + b[None, :]
    h = h0
    for _ in range(num_layers):
        h = alpha * (lambd * (a_hat @ h) + h0) / (1.0 + lambd) + (1.0 - alpha) * h
    return h


if __name__ == "__main__":
    # Small problem: N=32 nodes, F=64 input feats, C=16 classes.
    N, F, C = 32, 64, 16

    key = jax.random.PRNGKey(0)
    k_x, k_a, k_w, k_b = jax.random.split(key, 4)

    # Node features.
    x = jax.random.normal(k_x, (N, F), dtype=jnp.float32)

    # Deterministic random undirected graph, no self-loops ("nsl"), GCN sym-norm.
    a = (jax.random.uniform(k_a, (N, N)) < 0.2).astype(jnp.float32)
    a = jnp.maximum(a, a.T)
    a = a * (1.0 - jnp.eye(N, dtype=jnp.float32))
    deg = jnp.maximum(a.sum(axis=1), 1.0)          # clamp degrees at 1
    d_inv_sqrt = 1.0 / jnp.sqrt(deg)
    a_hat = a * d_inv_sqrt[:, None] * d_inv_sqrt[None, :]

    # Linear layer parameters (nn.Linear(num_feats, num_classes, bias=True)).
    bound = 1.0 / math.sqrt(F)
    w = jax.random.uniform(k_w, (F, C), minval=-bound, maxval=bound,
                           dtype=jnp.float32)
    b = jax.random.uniform(k_b, (C,), minval=-bound, maxval=bound,
                           dtype=jnp.float32)

    a_np, x_np = np.asarray(a_hat), np.asarray(x)
    w_np, b_np = np.asarray(w), np.asarray(b)

    configs = [
        dict(num_layers=3, alpha=1.0, lambd=1.0),   # default VSGC settings
        dict(num_layers=2, alpha=0.5, lambd=2.0),   # exercises the (1 - alpha) path
        dict(num_layers=0, alpha=1.0, lambd=1.0),   # degenerates to the linear layer
    ]
    for cfg in configs:
        out = jax.block_until_ready(vsgc_net_pre(a_hat, x, w, b, **cfg))
        ref = _reference(a_np, x_np, w_np, b_np, **cfg)
        np.testing.assert_allclose(np.asarray(out), ref, rtol=1e-5, atol=1e-5)

    # Fast path: adjacency / features / weight cast to bf16 ONCE outside the
    # call (amortized across steps); f32 accumulation + combine inside.
    a_bf16 = a_hat.astype(jnp.bfloat16)
    x_bf16 = x.astype(jnp.bfloat16)
    w_bf16 = w.astype(jnp.bfloat16)
    out_bf16 = jax.block_until_ready(
        vsgc_net_pre(a_bf16, x_bf16, w_bf16, b, num_layers=3, alpha=1.0,
                     lambd=1.0))
    ref = _reference(a_np, x_np, w_np, b_np, num_layers=3, alpha=1.0, lambd=1.0)
    np.testing.assert_allclose(np.asarray(out_bf16), ref, rtol=3e-2, atol=3e-2)

    print("KERNEL_OK")
</pallas_src>

<mosaic_0001>
module attributes {stable_mosaic.version = 11 : i64} {
  func.func @_vsgc_kernel(%arg0: memref<32x32xf32, #tpu.memory_space<any>>, %arg1: memref<32x64xf32, #tpu.memory_space<vmem>>, %arg2: memref<64x128xf32, #tpu.memory_space<vmem>>, %arg3: memref<1x128xf32, #tpu.memory_space<vmem>>, %arg4: memref<32x128xf32, #tpu.memory_space<vmem>>, %arg5: memref<32x32xf32, #tpu.memory_space<vmem>>, %arg6: memref<!tpu.dma_semaphore, #tpu.memory_space<semaphore_mem>>) attributes {dimension_semantics = [], scalar_prefetch = 0 : i64, scratch_operands = 2 : i64, tpu.core_type = #tpu.core_type<tc>} {
    tpu.enqueue_dma source(%arg0 : memref<32x32xf32, #tpu.memory_space<any>>) target(%arg5 : memref<32x32xf32, #tpu.memory_space<vmem>>) target_semaphore(%arg6 : memref<!tpu.dma_semaphore, #tpu.memory_space<semaphore_mem>>)
    %c0 = arith.constant 0 : index
    %c0_0 = arith.constant 0 : index
    %0 = vector.load %arg1[%c0, %c0_0] : memref<32x64xf32, #tpu.memory_space<vmem>>, vector<32x64xf32>
    %c0_1 = arith.constant 0 : index
    %c0_2 = arith.constant 0 : index
    %1 = vector.load %arg2[%c0_1, %c0_2] : memref<64x128xf32, #tpu.memory_space<vmem>>, vector<64x128xf32>
    %cst = arith.constant dense<0.000000e+00> : vector<32x128xf32>
    %2 = tpu.matmul %0, %1, %cst {dimension_numbers = #tpu.dot_dimension_numbers<[1], [0], [0], [1], [0, 0, 1, 1], [], []>} : vector<32x64xf32>, vector<64x128xf32>, vector<32x128xf32> -> vector<32x128xf32>
    %c0_3 = arith.constant 0 : index
    %c0_4 = arith.constant 0 : index
    %3 = vector.load %arg3[%c0_3, %c0_4] : memref<1x128xf32, #tpu.memory_space<vmem>>, vector<1x128xf32>
    %4 = vector.broadcast %3 : vector<1x128xf32> to vector<32x128xf32>
    %5 = arith.addf %2, %4 : vector<32x128xf32>
    %cst_5 = arith.constant 5.000000e-01 : f32
    %6 = vector.broadcast %cst_5 : f32 to vector<32x128xf32>
    %7 = arith.mulf %6, %5 : vector<32x128xf32>
    tpu.wait_dma2 semaphore(%arg6 : memref<!tpu.dma_semaphore, #tpu.memory_space<semaphore_mem>>) src(%arg0 : memref<32x32xf32, #tpu.memory_space<any>>) dst(%arg5 : memref<32x32xf32, #tpu.memory_space<vmem>>)
    %c0_i32 = arith.constant 0 : i32
    %c0_6 = arith.constant 0 : index
    %c0_7 = arith.constant 0 : index
    %8 = vector.load %arg5[%c0_6, %c0_7] : memref<32x32xf32, #tpu.memory_space<vmem>>, vector<32x32xf32>
    %cst_8 = arith.constant dense<0.000000e+00> : vector<32x128xf32>
    %9 = tpu.matmul %8, %5, %cst_8 {dimension_numbers = #tpu.dot_dimension_numbers<[1], [0], [0], [1], [0, 0, 1, 1], [], []>} : vector<32x32xf32>, vector<32x128xf32>, vector<32x128xf32> -> vector<32x128xf32>
    %cst_9 = arith.constant 5.000000e-01 : f32
    %10 = vector.broadcast %cst_9 : f32 to vector<32x128xf32>
    %11 = arith.mulf %10, %9 : vector<32x128xf32>
    %12 = arith.addf %11, %7 : vector<32x128xf32>
    %c1_i32 = arith.constant 1 : i32
    %c0_10 = arith.constant 0 : index
    %c0_11 = arith.constant 0 : index
    %13 = vector.load %arg5[%c0_10, %c0_11] : memref<32x32xf32, #tpu.memory_space<vmem>>, vector<32x32xf32>
    %cst_12 = arith.constant dense<0.000000e+00> : vector<32x128xf32>
    %14 = tpu.matmul %13, %12, %cst_12 {dimension_numbers = #tpu.dot_dimension_numbers<[1], [0], [0], [1], [0, 0, 1, 1], [], []>} : vector<32x32xf32>, vector<32x128xf32>, vector<32x128xf32> -> vector<32x128xf32>
    %cst_13 = arith.constant 5.000000e-01 : f32
    %15 = vector.broadcast %cst_13 : f32 to vector<32x128xf32>
    %16 = arith.mulf %15, %14 : vector<32x128xf32>
    %17 = arith.addf %16, %7 : vector<32x128xf32>
    %c2_i32 = arith.constant 2 : i32
    %c0_14 = arith.constant 0 : index
    %c0_15 = arith.constant 0 : index
    %18 = vector.load %arg5[%c0_14, %c0_15] : memref<32x32xf32, #tpu.memory_space<vmem>>, vector<32x32xf32>
    %cst_16 = arith.constant dense<0.000000e+00> : vector<32x128xf32>
    %19 = tpu.matmul %18, %17, %cst_16 {dimension_numbers = #tpu.dot_dimension_numbers<[1], [0], [0], [1], [0, 0, 1, 1], [], []>} : vector<32x32xf32>, vector<32x128xf32>, vector<32x128xf32> -> vector<32x128xf32>
    %cst_17 = arith.constant 5.000000e-01 : f32
    %20 = vector.broadcast %cst_17 : f32 to vector<32x128xf32>
    %21 = arith.mulf %20, %19 : vector<32x128xf32>
    %22 = arith.addf %21, %7 : vector<32x128xf32>
    %c0_18 = arith.constant 0 : index
    %c0_19 = arith.constant 0 : index
    %23 = vector.load %arg4[%c0_18, %c0_19] : memref<32x128xf32, #tpu.memory_space<vmem>>, vector<32x128xf32>
    tpu.vector_store %arg4[%c0_18, %c0_19], %22 {strides = array<i32>} : memref<32x128xf32, #tpu.memory_space<vmem>>, vector<32x128xf32>,
    return
  }
}

</mosaic_0001>

<bundles_post_ra>
// kernel: tpu_custom_call.1
= control target key start
LH: loop header
LB: loop body
LE: loop exit
PB: predicated region body
PF: predicated region fallthrough
CT: control target
= control target key end

     0   :  { %9 = vsyncpa [#allocation5], 0  ;;  %s894_s0 = inlined_call_operand.hbm [shape: f32[32,32], index: 0, kind: input, shape index: {}]   ;;  %s895_s1 = inlined_call_operand.hbm [shape: f32[32,64], index: 1, kind: input, shape index: {}]   ;;  %s896_s2 = inlined_call_operand.hbm [shape: f32[64,128], index: 2, kind: input, shape index: {}]   ;;  %s897_s3 = inlined_call_operand.vmem [shape: f32[1,128], index: 3, kind: input, shape index: {}]   ;;  %s898_s4 = inlined_call_operand.hbm [shape: f32[32,128], index: 4, kind: output, shape index: {}]  }
   0x1   :  { %10 = vsyncpa [#allocation8], 0 }
   0x2   :  { %11 = vsyncpa [#allocation6], 0  ;;  %s767_s15 = smov [#allocation4]   ;;  %s671_s19 = scalar_lea.hbm %s895_s1, 512 }
   0x3   :  { %s17_s16 = sshll.u32 %s767_s15, 4  ;;  %p672_p0 = scmp.ne.s32.totalorder %s895_s1, %s671_s19  ;;  %s18_s16 = int_to_ptr.vmem [resolvable:$true] %s17_s16 }
   0x4   :  { %p675_p1 = scmp.lt.u32.totalorder %s671_s19, %s895_s1 }
   0x6   :  { %p677_p2 = pnand %p675_p1, %p672_p0 }
   0x8   :  { %680 = shalt.err (!%p677_p2)
}
   0x9   :  { %s681_s24 = scalar_lea.vmem %s18_s16, 512  ;;  %p686_p4 = scmp.lt.s32.totalorder %s18_s16, %s18_s16 }
   0xa   :  { %p682_p3 = scmp.ne.s32.totalorder %s18_s16, %s681_s24  ;;  %p687_p5 = scmp.lt.s32.totalorder %s681_s24, %s681_s24 }
   0xc   :  { %p688_p6 = por %p687_p5, %p686_p4 }
   0xe   :  { %p689_p7 = pnand %p688_p6, %p682_p3 }
  0x10   :  { %692 = shalt.err (!%p689_p7)
}
  0x11   :  { %s768_s25 = smov 128   ;;  %s769_s26 = smov 8  }
  0x12   :  { %23 = dma.hbm_to_vmem [thread:$0]  %s895_s1, 512, %s18_s16, [#allocation5], %s768_s25, %s768_s25, %s769_s26  }
  0x13   :  { %s770_s29 = smov [#allocation7]   ;;  %s693_s7 = scalar_lea.hbm %s896_s2, 1024 }
  0x14   :  { %s29_s30 = sshll.u32 %s770_s29, 4  ;;  %p694_p8 = scmp.ne.s32.totalorder %s896_s2, %s693_s7  ;;  %s30_s30 = int_to_ptr.vmem [resolvable:$true] %s29_s30 }
  0x15   :  { %p697_p9 = scmp.lt.u32.totalorder %s693_s7, %s896_s2 }
  0x17   :  { %p699_p10 = pnand %p697_p9, %p694_p8 }
  0x19   :  { %702 = shalt.err (!%p699_p10)
}
  0x1a   :  { %s703_s12 = scalar_lea.vmem %s30_s30, 1024  ;;  %p708_p12 = scmp.lt.s32.totalorder %s30_s30, %s30_s30 }
  0x1b   :  { %p704_p11 = scmp.ne.s32.totalorder %s30_s30, %s703_s12  ;;  %p709_p13 = scmp.lt.s32.totalorder %s703_s12, %s703_s12 }
  0x1d   :  { %p710_p0 = por %p709_p13, %p708_p12 }
  0x1f   :  { %p711_p1 = pnand %p710_p0, %p704_p11 }
  0x21   :  { %714 = shalt.err (!%p711_p1)
}
  0x22   :  { %35 = dma.hbm_to_vmem [thread:$0]  %s896_s2, 1024, %s30_s30, [#allocation8], %s768_s25, %s768_s25, %s769_s26  }
  0x23   :  { %759 = dma.done.wait [#allocation5], 512  }
  0x24   :  { %760 = vsyncadd [#allocation5], 4294966784 }
  0x25   :  { %761 = dma.done.wait [#allocation8], 1024  }
  0x26   :  { %762 = vsyncadd [#allocation8], 4294966272  ;;  %v59_v0 = vld [vmem:[#allocation7] sm:$0xff]  ;;  %v60_v1 = vld [vmem:[#allocation7 + $0x8] sm:$0xff]  ;;  %vm74_vm0 = vcmask 523264   ;;  %s771_s2 = smov [#allocation2]  }
  0x27   :  { %v61_v2 = vld [vmem:[#allocation7 + $0x10] sm:$0xff]  ;;  %v621_v3 = vpack.c.bf16 %v60_v1, %v59_v0  ;;  %v62_v4 = vld [vmem:[#allocation7 + $0x18] sm:$0xff]  ;;  %v63_v6 = vld [vmem:[#allocation7 + $0x20] sm:$0xff]  ;;  %s51_s14 = sshll.u32 %s771_s2, 4  ;;  %s715_s17 = scalar_lea.hbm %s894_s0, 512  ;;  %s52_s14 = int_to_ptr.vmem [resolvable:$true] %s51_s14 }
  0x28   :  { %v625_v5 = vpack.c.bf16 %v62_v4, %v61_v2  ;;  %v64_v7 = vld [vmem:[#allocation7 + $0x28] sm:$0xff]  ;;  %v55_v8 = vld [vmem:[#allocation4] sm:$0xff]  ;;  %v65_v10 = vld [vmem:[#allocation7 + $0x30] sm:$0xff]  ;;  %p716_p2 = scmp.ne.s32.totalorder %s894_s0, %s715_s17  ;;  %p719_p3 = scmp.lt.u32.totalorder %s715_s17, %s894_s0 }
  0x29   :  { %622 = vmatprep.subr.bf16.mxu0 %v621_v3  ;;  %573 = vmatprep.mubr.msk.f32.mxu0 %vm74_vm0, %v55_v8  ;;  %v629_v9 = vpack.c.bf16 %v64_v7, %v63_v6  ;;  %v66_v11 = vld [vmem:[#allocation7 + $0x38] sm:$0xff]  ;;  %v56_v13 = vld [vmem:[#allocation4 + $0x8] sm:$0xff]  ;;  %v57_v14 = vld [vmem:[#allocation4 + $0x10] sm:$0xff] }
  0x2a   :  { %624 = vmatpush3.bf16.msra.mxu0 %v621_v3  ;;  %v633_v12 = vpack.c.bf16 %v66_v11, %v65_v10  ;;  %v58_v15 = vld [vmem:[#allocation4 + $0x18] sm:$0xff]  ;;  %p721_p4 = pnand %p719_p3, %p716_p2 }
  0x2b   :  { %626 = vmatprep.subr.bf16.mxu0 %v625_v5 }
  0x2e   :  { %628 = vmatpush3.bf16.msra.mxu0 %v625_v5 }
  0x2f   :  { %630 = vmatprep.subr.bf16.mxu0 %v629_v9 }
  0x32   :  { %632 = vmatpush3.bf16.msra.mxu0 %v629_v9 }
  0x33   :  { %634 = vmatprep.subr.bf16.mxu0 %v633_v12 }
  0x36   :  { %636 = vmatpush3.bf16.msra.mxu0 %v633_v12 }
  0x39   :  { %574 = vmatmul.mubr.msk.f32.vlgmr.msra.gmra.mrb[0].mxu0 %vm74_vm0, %v56_v13 }
  0x3a   :  { %576 = vmatprep.mubr.msk.f32.mxu0 %vm74_vm0, %v57_v14 }
  0x3d   :  { %577 = vmatmul.mubr.msk.f32.gmra.mrb[2].mxu0 %vm74_vm0, %v58_v15 }
  0x3e   :  { %724 = shalt.err (!%p721_p4)  }
  0x3f   :  { %s725_s22 = scalar_lea.vmem %s52_s14, 512  ;;  %p730_p6 = scmp.lt.s32.totalorder %s52_s14, %s52_s14 }
  0x40   :  { %p726_p5 = scmp.ne.s32.totalorder %s52_s14, %s725_s22  ;;  %p731_p7 = scmp.lt.s32.totalorder %s725_s22, %s725_s22 }
  0x42   :  { %p732_p8 = por %p731_p7, %p730_p6 }
  0x44   :  { %p733_p9 = pnand %p732_p8, %p726_p5 }
  0x46   :  { %736 = shalt.err (!%p733_p9)  }
  0x47   :  { %54 = dma.hbm_to_vmem [thread:$0]  %s894_s0, 512, %s52_s14, [#allocation3]  ;;  %v503_v16 = vld [vmem:[%s897_s3] ss:$0 sm:$0xff] }
 0x10c   :  { %v575_v17 = vpop.f32.mrb[0].mxu0 }
 0x10d   :  { %v159_v18 = vadd.f32 %v575_v17, %v503_v16  ;;  %v153_v19 = vpop.f32.mrb[1].mxu0 }
 0x10e   :  { %v154_v20 = vadd.f32 %v503_v16, %v153_v19 }
 0x10f   :  { %v847_v21 = vmul.f32 0.5, %v159_v18 }
 0x110   :  { %v849_v22 = vmul.f32 0.5, %v154_v20  ;;  %v578_v23 = vpop.f32.mrb[2].mxu0 }
 0x111   :  { %v169_v24 = vadd.f32 %v578_v23, %v503_v16  ;;  %v163_v25 = vpop.f32.mrb[3].mxu0 }
 0x112   :  { %v164_v26 = vadd.f32 %v503_v16, %v163_v25 }
 0x113   :  { %v851_v27 = vmul.f32 0.5, %v169_v24 }
 0x114   :  { %v853_v28 = vmul.f32 0.5, %v164_v26 }
 0x115   :  { %763 = dma.done.wait [#allocation3], 512 }
 0x116   :  { %764 = vsyncadd [#allocation3], 4294966784  ;;  %v637_v29 = vpack.c.bf16 %v159_v18, %v154_v20  ;;  %v641_v30 = vpack.c.bf16 %v169_v24, %v164_v26  ;;  %vm183_vm1 = vcmask 261120   ;;  %v179_v31 = vld [vmem:[#allocation2] sm:$0xff]  ;;  %v180_v32 = vld [vmem:[#allocation2 + $0x8] sm:$0xff]  ;;  %s772_s0 = smov [#allocation9]  }
 0x117   :  { %587 = vmatprep.mubr.msk.f32.mxu1 %vm183_vm1, %v179_v31  ;;  %v181_v33 = vld [vmem:[#allocation2 + $0x10] sm:$0xff]  ;;  %615 = vmatprep.mubr.msk.f32.mxu0 %vm183_vm1, %v179_v31  ;;  %v182_v34 = vld [vmem:[#allocation2 + $0x18] sm:$0xff]  ;;  %s484_s3 = sshll.u32 %s772_s0, 4  ;;  %s485_s3 = int_to_ptr.vmem [resolvable:$true] %s484_s3 }
 0x118   :  { %638 = vmatprep.subr.bf16.mxu1 %v637_v29  ;;  %s737_s29 = scalar_lea.vmem %s485_s3, 512  ;;  %p742_p11 = scmp.lt.s32.totalorder %s485_s3, %s485_s3 }
 0x119   :  { %640 = vmatpush3.bf16.msra.mxu1 %v637_v29  ;;  %p738_p10 = scmp.ne.s32.totalorder %s485_s3, %s737_s29  ;;  %p743_p12 = scmp.lt.s32.totalorder %s737_s29, %s737_s29 }
 0x11a   :  { %642 = vmatprep.subr.bf16.mxu1 %v641_v30 }
 0x11b   :  { %p744_p13 = por %p743_p12, %p742_p11 }
 0x11d   :  { %644 = vmatpush3.bf16.msra.mxu1 %v641_v30  ;;  %p745_p0 = pnand %p744_p13, %p738_p10 }
 0x120   :  { %588 = vmatmul.mubr.msk.f32.vlgmr.msra.gmra.mrb[0].mxu1 %vm183_vm1, %v180_v32 }
 0x121   :  { %590 = vmatprep.mubr.msk.f32.mxu1 %vm183_vm1, %v181_v33 }
 0x124   :  { %591 = vmatmul.mubr.msk.f32.gmra.mrb[2].mxu1 %vm183_vm1, %v182_v34 }
 0x125   :  { %601 = vmatprep.mubr.msk.f32.mxu1 %vm183_vm1, %v179_v31 }
 0x1f3   :  { %v589_v35 = vpop.f32.mrb[0].mxu1 }
 0x1f4   :  { %v282_v36 = vmul.f32 0.5, %v589_v35  ;;  %v262_v37 = vpop.f32.mrb[1].mxu1 }
 0x1f5   :  { %v281_v38 = vmul.f32 0.5, %v262_v37 }
 0x1f6   :  { %v286_v39 = vadd.f32 %v282_v36, %v847_v21 }
 0x1f7   :  { %v285_v40 = vadd.f32 %v281_v38, %v849_v22  ;;  %v592_v41 = vpop.f32.mrb[2].mxu1 }
 0x1f8   :  { %v284_v42 = vmul.f32 0.5, %v592_v41  ;;  %v272_v43 = vpop.f32.mrb[3].mxu1 }
 0x1f9   :  { %v645_v44 = vpack.c.bf16 %v286_v39, %v285_v40  ;;  %v283_v45 = vmul.f32 0.5, %v272_v43 }
 0x1fa   :  { %v288_v46 = vadd.f32 %v284_v42, %v851_v27 }
 0x1fb   :  { %v287_v47 = vadd.f32 %v283_v45, %v853_v28  ;;  %646 = vmatprep.subr.bf16.mxu1 %v645_v44 }
 0x1fc   :  { %648 = vmatpush3.bf16.msra.mxu1 %v645_v44 }
 0x1fd   :  { %v649_v48 = vpack.c.bf16 %v288_v46, %v287_v47 }
 0x1ff   :  { %650 = vmatprep.subr.bf16.mxu1 %v649_v48 }
 0x200   :  { %652 = vmatpush3.bf16.msra.mxu1 %v649_v48 }
 0x203   :  { %602 = vmatmul.mubr.msk.f32.vlgmr.msra.gmra.mrb[4].mxu1 %vm183_vm1, %v180_v32 }
 0x204   :  { %604 = vmatprep.mubr.msk.f32.mxu1 %vm183_vm1, %v181_v33 }
 0x207   :  { %605 = vmatmul.mubr.msk.f32.gmra.mrb[6].mxu1 %vm183_vm1, %v182_v34 }
 0x208   :  { %618 = vmatprep.mubr.msk.f32.mxu1 %vm183_vm1, %v181_v33 }
 0x2d6   :  { %v603_v49 = vpop.f32.mrb[4].mxu1 }
 0x2d7   :  { %v375_v50 = vmul.f32 0.5, %v603_v49  ;;  %v355_v51 = vpop.f32.mrb[5].mxu1 }
 0x2d8   :  { %v374_v52 = vmul.f32 0.5, %v355_v51 }
 0x2d9   :  { %v379_v53 = vadd.f32 %v375_v50, %v847_v21 }
 0x2da   :  { %v378_v54 = vadd.f32 %v374_v52, %v849_v22  ;;  %v606_v55 = vpop.f32.mrb[6].mxu1 }
 0x2db   :  { %v377_v56 = vmul.f32 0.5, %v606_v55  ;;  %v365_v57 = vpop.f32.mrb[7].mxu1 }
 0x2dc   :  { %v653_v58 = vpack.c.bf16 %v379_v53, %v378_v54  ;;  %v376_v59 = vmul.f32 0.5, %v365_v57 }
 0x2dd   :  { %v381_v60 = vadd.f32 %v377_v56, %v851_v27 }
 0x2de   :  { %v380_v61 = vadd.f32 %v376_v59, %v853_v28  ;;  %654 = vmatprep.subr.bf16.mxu0 %v653_v58  ;;  %661 = vmatprep.subr.bf16.mxu1 %v653_v58 }
 0x2df   :  { %656 = vmatpush3.bf16.msra.mxu0 %v653_v58  ;;  %663 = vmatpush3.bf16.msra.mxu1 %v653_v58 }
 0x2e0   :  { %v657_v62 = vpack.c.bf16 %v381_v60, %v380_v61 }
 0x2e2   :  { %658 = vmatprep.subr.bf16.mxu0 %v657_v62  ;;  %662 = vmatprep.subr.bf16.mxu1 %v657_v62 }
 0x2e3   :  { %660 = vmatpush3.bf16.msra.mxu0 %v657_v62  ;;  %664 = vmatpush3.bf16.msra.mxu1 %v657_v62 }
 0x2e6   :  { %616 = vmatmul.mubr.msk.f32.vlgmr.msra.gmra.mrb[4].mxu0 %vm183_vm1, %v180_v32  ;;  %619 = vmatmul.mubr.msk.f32.vlgmr.msra.gmra.mrb[8].mxu1 %vm183_vm1, %v182_v34 }
 0x3b9   :  { %v617_v63 = vpop.f32.mrb[4].mxu0  ;;  %v620_v0 = vpop.f32.mrb[8].mxu1 }
 0x3ba   :  { %v468_v1 = vmul.f32 0.5, %v617_v63  ;;  %v470_v2 = vmul.f32 0.5, %v620_v0  ;;  %v448_v3 = vpop.f32.mrb[5].mxu0  ;;  %v458_v4 = vpop.f32.mrb[9].mxu1 }
 0x3bb   :  { %v467_v5 = vmul.f32 0.5, %v448_v3  ;;  %v469_v6 = vmul.f32 0.5, %v458_v4 }
 0x3bc   :  { %v472_v7 = vadd.f32 %v468_v1, %v847_v21  ;;  %v474_v8 = vadd.f32 %v470_v2, %v851_v27 }
 0x3bd   :  { %v471_v9 = vadd.f32 %v467_v5, %v849_v22  ;;  %v473_v10 = vadd.f32 %v469_v6, %v853_v28 }
 0x3be   :  { %476 = vst [vmem:[#allocation9 + $0x8] sm:$0xff] %v472_v7  ;;  %478 = vst [vmem:[#allocation9 + $0x18] sm:$0xff] %v474_v8 }
 0x3bf   :  { %475 = vst [vmem:[#allocation9] sm:$0xff] %v471_v9  ;;  %477 = vst [vmem:[#allocation9 + $0x10] sm:$0xff] %v473_v10 }
 0x3c0   :  { %748 = shalt.err (!%p745_p0)
}
 0x3c1   :  { %s749_s6 = scalar_lea.hbm %s898_s4, 512 }
 0x3c2   :  { %p750_p1 = scmp.ne.s32.totalorder %s898_s4, %s749_s6  ;;  %p753_p2 = scmp.lt.u32.totalorder %s749_s6, %s898_s4 }
 0x3c4   :  { %p755_p3 = pnand %p753_p2, %p750_p1 }
 0x3c6   :  { %758 = shalt.err (!%p755_p3)
}
 0x3c7   :  { %490 = dma.vmem_to_hbm [thread:$0]  %s485_s3, 512, %s898_s4, [#allocation6], %s768_s25, %s768_s25, %s769_s26  }
 0x3c8   :  { %765 = dma.done.wait [#allocation6], 512  }
 0x3c9   :  { %766 = vsyncadd [#allocation6], 4294966784 }
 0x3ca   :  { %494 = vsyncpa [#allocation5], 1 }
 0x3cb   :  { %495 = vsyncpa [#allocation8], 1 }
 0x3cc   :  { %496 = vsyncpa [#allocation6], 1 }
 0x3cd   :  { %497 = vsyncmov [#allocation3] }
 0x3d0   :  { %s498_s1 = vpop.sfrf %497 }
 0x3d1   :  { %p520_p4 = scmp.ne.s32.totalorder %s498_s1, 0 }
 0x3d3   :  { %502 = shalt.err (%p520_p4)  }

</bundles_post_ra>
